<compile_context>
chip_gen: v7x
topology: tpu7x:2x2x1
jax: 0.10.0
libtpu: 0.0.40
codegen_flags: <defaults>
</compile_context>

<pallas_src>
import functools

import jax
import jax.numpy as jnp
from jax.experimental import pallas as pl
from jax.experimental.pallas import tpu as pltpu


def _steep_sigmoid_kernel(x_ref, o_ref, *, half_beta):
    # f32 compute on-chip (exact, works on all chips incl. v5e); native-dtype
    # HBM traffic. sigmoid(beta*x) == 0.5 + 0.5*tanh(0.5*beta*x).
    x = x_ref[...].astype(jnp.float32)
    y = 0.5 + 0.5 * jnp.tanh(half_beta * x)   # single EUP op + VPU FMA
    o_ref[...] = y.astype(o_ref.dtype)


def _sigmoid_jnp(x, beta, dtype):
    """Plain-jnp fallback for tiny tails (<128 elements)."""
    xf = x.astype(jnp.float32)
    y = 0.5 + 0.5 * jnp.tanh(0.5 * beta * xf)
    return y.astype(dtype)


def _choose_layout(n):
    """Lane-dense 2D layout (W, rows) for n flattened elements; n % 128 == 0."""
    for w in (2048, 1024, 512, 256, 128):
        if n % w == 0:
            return w, n // w
    raise AssertionError("n must be a multiple of 128")


def steep_sigmoid(x, beta=10.0, target_block_bytes=2 * 1024 * 1024):
    """Applies 1/(1+exp(-beta*x)) elementwise. Any shape, any float dtype."""
    orig_shape = x.shape
    dtype = x.dtype
    n = x.size
    if n == 0:
        return x
    itemsize = jnp.dtype(dtype).itemsize

    # Keep bf16/f16 blocks smaller: double-buffered in+out blocks plus the
    # in-kernel f32 temporaries must fit comfortably in v5e's 16 MiB scoped
    # VMEM default (and leave headroom on v7x's 64 MiB physical VMEM).
    if itemsize < 4:
        target_block_bytes = min(target_block_bytes, 1024 * 1024)

    xf = x.reshape(-1)
    n_main = (n // 128) * 128
    tail = n - n_main

    if n_main == 0:
        # Fewer than 128 elements: not worth a Pallas launch.
        return _sigmoid_jnp(xf, beta, dtype).reshape(orig_shape)

    w, rows = _choose_layout(n_main)
    x2d = xf[:n_main].reshape(rows, w)

    # ~target_block_bytes blocks (in native dtype), rows a multiple of 8.
    block_rows = max(8, (target_block_bytes // (w * itemsize)) // 8 * 8)

    # Grid-step floor: if the tensor is big enough, ensure >= 4 grid steps so
    # the "parallel" axis shards across both v7x TensorCores and pipelining
    # (prefetch i+1 / writeback i-1) has work to overlap.
    min_steps = 4
    if rows >= min_steps * 8:
        cap = max(8, (pl.cdiv(rows, min_steps) // 8) * 8)
        block_rows = min(block_rows, cap)

    if block_rows >= rows:
        block_rows = rows  # full extent (allowed even if not a multiple of 8)

    grid = (pl.cdiv(rows, block_rows),)

    out2d = pl.pallas_call(
        functools.partial(_steep_sigmoid_kernel, half_beta=0.5 * float(beta)),
        out_shape=jax.ShapeDtypeStruct((rows, w), dtype),
        grid=grid,
        in_specs=[pl.BlockSpec((block_rows, w), lambda i: (i, 0))],
        out_specs=pl.BlockSpec((block_rows, w), lambda i: (i, 0)),
        compiler_params=pltpu.CompilerParams(
            dimension_semantics=("parallel",),
        ),
    )(x2d)

    out = out2d.reshape(-1)
    if tail:
        out_tail = _sigmoid_jnp(xf[n_main:], beta, dtype)
        out = jnp.concatenate([out, out_tail])
    return out.reshape(orig_shape)


if __name__ == "__main__":
    key = jax.random.PRNGKey(0)
    beta = 10.0

    # NCHW input consistent with the module: batch=2, channels=4, 16x16.
    x = jax.random.normal(key, (2, 4, 16, 16), dtype=jnp.float32)
    y = jax.block_until_ready(steep_sigmoid(x, beta=beta))
    y_ref = 1.0 / (1.0 + jnp.exp(-beta * x))
    assert y.shape == x.shape and y.dtype == x.dtype
    assert jnp.allclose(y, y_ref, atol=1e-6, rtol=1e-6)

    # Native bf16 I/O path (f32 compute in-kernel, bf16 in/out of HBM).
    xb = x.astype(jnp.bfloat16)
    yb = jax.block_until_ready(steep_sigmoid(xb, beta=beta))
    yb_ref = (1.0 / (1.0 + jnp.exp(-beta * xb.astype(jnp.float32)))).astype(jnp.bfloat16)
    assert yb.shape == xb.shape and yb.dtype == xb.dtype
    assert jnp.allclose(
        yb.astype(jnp.float32), yb_ref.astype(jnp.float32), atol=1e-2, rtol=2e-2
    )

    # Non-128-aligned element count exercises the prefix + jnp-tail path.
    x_odd = jax.random.normal(jax.random.PRNGKey(1), (1000,), dtype=jnp.float32)
    y_odd = jax.block_until_ready(steep_sigmoid(x_odd, beta=beta))
    y_odd_ref = 1.0 / (1.0 + jnp.exp(-beta * x_odd))
    assert y_odd.shape == x_odd.shape
    assert jnp.allclose(y_odd, y_odd_ref, atol=1e-6, rtol=1e-6)

    # Larger tensor exercises the multi-step grid (grid-floor / megacore path).
    x_big = jax.random.normal(jax.random.PRNGKey(2), (64, 64, 128), dtype=jnp.float32)
    y_big = jax.block_until_ready(steep_sigmoid(x_big, beta=beta))
    y_big_ref = 1.0 / (1.0 + jnp.exp(-beta * x_big))
    assert jnp.allclose(y_big, y_big_ref, atol=1e-6, rtol=1e-6)

    print("KERNEL_OK")
</pallas_src>

<mosaic_0001>
module attributes {stable_mosaic.version = 11 : i64} {
  func.func @_steep_sigmoid_kernel(%arg0: i32, %arg1: memref<1x2048xf32, #tpu.memory_space<vmem>>, %arg2: memref<1x2048xf32, #tpu.memory_space<vmem>>) attributes {dimension_semantics = [#tpu.dimension_semantics<parallel>], iteration_bounds = array<i64: 1>, scalar_prefetch = 0 : i64, scratch_operands = 0 : i64, tpu.core_type = #tpu.core_type<tc>, window_params = [{transform_indices = @transform_0, window_bounds = array<i64: 1, 2048>}, {transform_indices = @transform_1, window_bounds = array<i64: 1, 2048>}]} {
    %c0 = arith.constant 0 : index
    %c0_0 = arith.constant 0 : index
    %0 = vector.load %arg1[%c0, %c0_0] : memref<1x2048xf32, #tpu.memory_space<vmem>>, vector<1x2048xf32>
    %cst = arith.constant 5.000000e+00 : f32
    %1 = vector.broadcast %cst : f32 to vector<1x2048xf32>
    %2 = arith.mulf %1, %0 : vector<1x2048xf32>
    %3 = math.tanh %2 : vector<1x2048xf32>
    %cst_1 = arith.constant 5.000000e-01 : f32
    %4 = vector.broadcast %cst_1 : f32 to vector<1x2048xf32>
    %5 = arith.mulf %4, %3 : vector<1x2048xf32>
    %cst_2 = arith.constant 5.000000e-01 : f32
    %6 = vector.broadcast %cst_2 : f32 to vector<1x2048xf32>
    %7 = arith.addf %6, %5 : vector<1x2048xf32>
    %c0_3 = arith.constant 0 : index
    %c0_4 = arith.constant 0 : index
    %8 = vector.load %arg2[%c0_3, %c0_4] : memref<1x2048xf32, #tpu.memory_space<vmem>>, vector<1x2048xf32>
    tpu.vector_store %arg2[%c0_3, %c0_4], %7 {strides = array<i32>} : memref<1x2048xf32, #tpu.memory_space<vmem>>, vector<1x2048xf32>,
    return
  }
  func.func @transform_0(%arg0: i32) -> (i32, i32) {
    %c0_i32 = arith.constant 0 : i32
    %c0_i32_0 = arith.constant 0 : i32
    return %arg0, %c0_i32 : i32, i32
  }
  func.func @transform_1(%arg0: i32) -> (i32, i32) {
    %c0_i32 = arith.constant 0 : i32
    %c0_i32_0 = arith.constant 0 : i32
    return %arg0, %c0_i32 : i32, i32
  }
}

</mosaic_0001>

<bundles_post_ra>
// kernel: tpu_custom_call.1
= control target key start
LH: loop header
LB: loop body
LE: loop exit
PB: predicated region body
PF: predicated region fallthrough
CT: control target
= control target key end

     0   :  { %6 = vsyncpa [#allocation3], 0  ;;  %s138_s0 = inlined_call_operand.hbm [shape: f32[1,2048], index: 0, kind: input, shape index: {}]   ;;  %s139_s1 = inlined_call_operand.hbm [shape: f32[1,2048], index: 1, kind: output, shape index: {}]  }
   0x1   :  { %7 = vsyncpa [#allocation4], 0  ;;  %s102_s6 = smov [#allocation2]   ;;  %s54_s10 = scalar_lea.hbm %s138_s0, 256 }
   0x2   :  { %s14_s7 = sshll.u32 %s102_s6, 4  ;;  %p55_p0 = scmp.ne.s32.totalorder %s138_s0, %s54_s10  ;;  %s15_s7 = int_to_ptr.vmem [resolvable:$true] %s14_s7 }
   0x3   :  { %p58_p1 = scmp.lt.u32.totalorder %s54_s10, %s138_s0 }
   0x5   :  { %p60_p2 = pnand %p58_p1, %p55_p0 }
   0x7   :  { %63 = shalt.err (!%p60_p2)
}
   0x8   :  { %s64_s15 = scalar_lea.vmem %s15_s7, 256  ;;  %p69_p4 = scmp.lt.s32.totalorder %s15_s7, %s15_s7 }
   0x9   :  { %p65_p3 = scmp.ne.s32.totalorder %s15_s7, %s64_s15  ;;  %p70_p5 = scmp.lt.s32.totalorder %s64_s15, %s64_s15 }
   0xb   :  { %p71_p6 = por %p70_p5, %p69_p4 }
   0xd   :  { %p72_p7 = pnand %p71_p6, %p65_p3 }
   0xf   :  { %75 = shalt.err (!%p72_p7)
}
  0x10   :  { %17 = dma.hbm_to_vmem [thread:$0]  %s138_s0, 256, %s15_s7, [#allocation3]  }
  0x11   :  { %98 = dma.done.wait [#allocation3], 256  }
  0x12   :  { %99 = vsyncadd [#allocation3], 4294967040  ;;  %v21_v0 = vld [vmem:[#allocation2] sm:$0xff]  ;;  %v22_v1 = vld [vmem:[#allocation2 + $0x8] sm:$0xff]  ;;  %s103_s18 = smov [#allocation5]  }
  0x13   :  { %v23_v2 = vmul.f32 5.0, %v21_v0  ;;  %v24_v3 = vmul.f32 5.0, %v22_v1  ;;  %s39_s19 = sshll.u32 %s103_s18, 4  ;;  %s40_s19 = int_to_ptr.vmem [resolvable:$true] %s39_s19 }
  0x14   :  { %s76_s0 = scalar_lea.vmem %s40_s19, 256  ;;  %p81_p9 = scmp.lt.s32.totalorder %s40_s19, %s40_s19 }
  0x15   :  { %50 = vtanh.f32 %v23_v2  ;;  %p77_p8 = scmp.ne.s32.totalorder %s40_s19, %s76_s0  ;;  %p82_p10 = scmp.lt.s32.totalorder %s76_s0, %s76_s0 }
  0x16   :  { %52 = vtanh.f32 %v24_v3 }
  0x17   :  { %p83_p11 = por %p82_p10, %p81_p9 }
  0x19   :  { %p84_p12 = pnand %p83_p11, %p77_p8 }
  0x1f   :  { %v51_v4 = vpop.eup %50 }
  0x20   :  { %v53_v5 = vpop.eup %52  ;;  %v27_v6 = vmul.f32 0.5, %v51_v4 }
  0x21   :  { %v28_v7 = vmul.f32 0.5, %v53_v5 }
  0x22   :  { %v29_v8 = vadd.f32 0.5, %v27_v6 }
  0x23   :  { %v30_v9 = vadd.f32 0.5, %v28_v7 }
  0x24   :  { %31 = vst [vmem:[#allocation5] sm:$0xff] %v29_v8 }
  0x25   :  { %32 = vst [vmem:[#allocation5 + $0x8] sm:$0xff] %v30_v9 }
  0x26   :  { %87 = shalt.err (!%p84_p12)
}
  0x27   :  { %s88_s22 = scalar_lea.hbm %s139_s1, 256 }
  0x28   :  { %p89_p13 = scmp.ne.s32.totalorder %s139_s1, %s88_s22  ;;  %p92_p0 = scmp.lt.u32.totalorder %s88_s22, %s139_s1 }
  0x2a   :  { %p94_p1 = pnand %p92_p0, %p89_p13 }
  0x2c   :  { %97 = shalt.err (!%p94_p1)
}
  0x2d   :  { %42 = dma.vmem_to_hbm [thread:$0]  %s40_s19, 256, %s139_s1, [#allocation4]  }
  0x2e   :  { %100 = dma.done.wait [#allocation4], 256  }
  0x2f   :  { %101 = vsyncadd [#allocation4], 4294967040 }
  0x30   :  { %46 = vsyncpa [#allocation3], 1 }
  0x31   :  { %47 = vsyncpa [#allocation4], 1 }

</bundles_post_ra>
